<compile_context>
chip_gen: v7x
topology: tpu7x:2x2x1
jax: 0.10.0
libtpu: 0.0.40
codegen_flags: <defaults>
</compile_context>

<pallas_src>
import jax
import jax.numpy as jnp
import numpy as np
from jax.experimental import pallas as pl
from jax.experimental.pallas import tpu as pltpu

_LANE = 128
_SUBLANE_FOR_ITEMSIZE = {4: 8, 2: 16, 1: 32}
_LANE_CANDIDATES = (8192, 4096, 2048, 1024, 512, 256, 128)
_MIB = 1024 * 1024
_ADD_CONST = 0.6


def _tpu_generation_params():
    """(target_block_bytes, num_cores, vmem_capacity) for the local chip.

    Conservative v7x-safe defaults (64 MiB VMEM/core, 2 cores) if the query fails.
    """
    vmem_capacity = 64 * _MIB
    num_cores = 2
    try:
        info = pltpu.get_tpu_info()
        vmem_capacity = int(getattr(info, "vmem_capacity_bytes", vmem_capacity))
        nc = getattr(info, "num_cores", None)
        if nc is not None:
            num_cores = int(nc)
        else:
            # Heuristic: 64 MiB VMEM per TensorCore => v7x (2 TCs); 128 MiB => v5e/v6e (1 TC).
            num_cores = 2 if vmem_capacity <= 64 * _MIB else 1
    except Exception:
        pass
    if vmem_capacity <= 64 * _MIB:
        target_block_bytes = 8 * _MIB    # 2-in + 2-out double-buffer ~ 32 MiB / core
    else:
        target_block_bytes = 16 * _MIB   # ~64 MiB footprint, ample on 128 MiB VMEM
    return target_block_bytes, num_cores, vmem_capacity


def _make_add_scalar_kernel(const):
    def kernel(x_ref, o_ref):
        # Pure elementwise hot path: one wide load, one VPU add, one wide store.
        o_ref[...] = x_ref[...] + const
    return kernel


def add_scalar(x, *, min_pallas_elems=256 * 1024):
    """Equivalent of torch.add(x, torch.tensor([0.6], dtype=torch.float32))."""
    # torch promotion for non-float32 inputs (ints / half floats -> float32).
    if x.dtype != jnp.float32:
        out_dtype = jnp.promote_types(x.dtype, jnp.float32)
        return x.astype(out_dtype) + jnp.asarray(_ADD_CONST, out_dtype)

    const = np.float32(_ADD_CONST)
    n = x.size

    # Tiny or lane-ragged inputs: XLA's fused elementwise add beats kernel-launch
    # fixed cost; semantics are identical.
    if n < min_pallas_elems or n % _LANE != 0:
        return x + const

    itemsize = x.dtype.itemsize
    sublane = _SUBLANE_FOR_ITEMSIZE.get(itemsize, 8)

    # Lane-dense 2-D view with NO padding: widest lane count that divides n,
    # preferring one that leaves at least a full sublane group of rows.
    lanes = None
    for cand in _LANE_CANDIDATES:
        if n % cand == 0 and (n // cand) >= sublane:
            lanes = cand
            break
    if lanes is None:
        for cand in _LANE_CANDIDATES:
            if n % cand == 0:
                lanes = cand
                break
    rows = n // lanes
    x2d = jnp.reshape(x, (rows, lanes))     # free reshape of a contiguous array

    target_block_bytes, num_cores, vmem_capacity = _tpu_generation_params()
    row_bytes = lanes * itemsize

    # ~target_block_bytes per block, rounded down to a sublane multiple.
    tile_rows = max(sublane, (target_block_bytes // row_bytes) // sublane * sublane)

    # Multi-TC chips (v7x): target >= 2 grid steps per core so writeback of step i
    # overlaps the fetch of step i+1.  Single-TC chips keep the full-size block.
    if num_cores > 1 and rows > sublane:
        min_blocks = 2 * num_cores
        per_block = -(-rows // min_blocks)                 # ceil(rows / min_blocks)
        per_block = -(-per_block // sublane) * sublane     # round up to sublane mult
        tile_rows = min(tile_rows, per_block)
    tile_rows = min(tile_rows, rows)

    # Prefer a tile_rows that divides rows exactly (no masked ragged last block),
    # as long as it stays within ~2/3 of the chosen block size.
    if rows % tile_rows != 0 and tile_rows % sublane == 0:
        floor_t = max(sublane, ((2 * tile_rows) // 3) // sublane * sublane)
        t = tile_rows
        while t >= floor_t:
            if rows % t == 0:
                tile_rows = t
                break
            t -= sublane

    grid = (pl.cdiv(rows, tile_rows),)

    block_bytes = tile_rows * row_bytes
    # 2 input + 2 output double-buffers + headroom for internal scratch, capped
    # safely below the per-core physical VMEM.
    vmem_limit = min(4 * block_bytes + 16 * _MIB, vmem_capacity - 16 * _MIB)
    vmem_limit = int(max(vmem_limit, 32 * _MIB))

    out2d = pl.pallas_call(
        _make_add_scalar_kernel(const),
        out_shape=jax.ShapeDtypeStruct((rows, lanes), x.dtype),
        grid_spec=pltpu.PrefetchScalarGridSpec(
            num_scalar_prefetch=0,
            grid=grid,
            in_specs=[pl.BlockSpec((tile_rows, lanes), lambda i: (i, 0))],
            out_specs=pl.BlockSpec((tile_rows, lanes), lambda i: (i, 0)),
        ),
        # The input is dead after this op in production; reuse its HBM buffer.
        # (XLA inserts a copy automatically if the input is still live.)
        input_output_aliases={0: 0},
        compiler_params=pltpu.CompilerParams(
            dimension_semantics=("parallel",),
            vmem_limit_bytes=vmem_limit,
        ),
    )(x2d)

    return jnp.reshape(out2d, x.shape)


if __name__ == "__main__":
    key = jax.random.PRNGKey(0)
    x = jax.random.normal(key, (2, 4, 16, 16), dtype=jnp.float32)

    # Force the Pallas path even though this test shape is below the production
    # small-input threshold.
    out = add_scalar(x, min_pallas_elems=0)
    out = jax.block_until_ready(out)

    expected = x + jnp.float32(0.6)
    assert out.shape == x.shape and out.dtype == x.dtype
    assert jnp.allclose(out, expected, atol=1e-6, rtol=1e-6)

    # Larger input exercises the multi-block tiled path (wide lanes, >= 2 blocks
    # per core on v7x, divisor-aligned final block).
    x2 = jax.random.normal(jax.random.PRNGKey(1), (4, 8, 64, 128), dtype=jnp.float32)
    out2 = jax.block_until_ready(add_scalar(x2, min_pallas_elems=0))
    assert jnp.allclose(out2, x2 + jnp.float32(0.6), atol=1e-6, rtol=1e-6)

    print("KERNEL_OK")
</pallas_src>

<mosaic_0001>
module attributes {stable_mosaic.version = 11 : i64} {
  func.func @kernel(%arg0: i32, %arg1: memref<8x256xf32, #tpu.memory_space<vmem>>, %arg2: memref<8x256xf32, #tpu.memory_space<vmem>>) attributes {dimension_semantics = [#tpu.dimension_semantics<parallel>], iteration_bounds = array<i64: 1>, scalar_prefetch = 0 : i64, scratch_operands = 0 : i64, tpu.core_type = #tpu.core_type<tc>, window_params = [{transform_indices = @transform_0, window_bounds = array<i64: 8, 256>}, {transform_indices = @transform_1, window_bounds = array<i64: 8, 256>}]} {
    %c0 = arith.constant 0 : index
    %c0_0 = arith.constant 0 : index
    %0 = vector.load %arg1[%c0, %c0_0] : memref<8x256xf32, #tpu.memory_space<vmem>>, vector<8x256xf32>
    %cst = arith.constant 6.000000e-01 : f32
    %1 = vector.broadcast %cst : f32 to vector<8x256xf32>
    %2 = arith.addf %0, %1 : vector<8x256xf32>
    %c0_1 = arith.constant 0 : index
    %c0_2 = arith.constant 0 : index
    %3 = vector.load %arg2[%c0_1, %c0_2] : memref<8x256xf32, #tpu.memory_space<vmem>>, vector<8x256xf32>
    tpu.vector_store %arg2[%c0_1, %c0_2], %2 {strides = array<i32>} : memref<8x256xf32, #tpu.memory_space<vmem>>, vector<8x256xf32>,
    return
  }
  func.func @transform_0(%arg0: i32) -> (i32, i32) {
    %c0_i32 = arith.constant 0 : i32
    %c0_i32_0 = arith.constant 0 : i32
    return %arg0, %c0_i32 : i32, i32
  }
  func.func @transform_1(%arg0: i32) -> (i32, i32) {
    %c0_i32 = arith.constant 0 : i32
    %c0_i32_0 = arith.constant 0 : i32
    return %arg0, %c0_i32 : i32, i32
  }
}

</mosaic_0001>

<bundles_post_ra>
// kernel: tpu_custom_call.1
= control target key start
LH: loop header
LB: loop body
LE: loop exit
PB: predicated region body
PF: predicated region fallthrough
CT: control target
= control target key end

     0   :  { %6 = vsyncpa [#allocation3], 0  ;;  %s128_s0 = inlined_call_operand.hbm [shape: f32[8,256], index: 0, kind: input, shape index: {}, may-alias: {0,1}]   ;;  %s129_s1 = inlined_call_operand.hbm [shape: f32[8,256], index: 1, kind: output, shape index: {}, may-alias: {0,1}]  }
   0x1   :  { %7 = vsyncpa [#allocation4], 0  ;;  %s92_s6 = smov [#allocation2]   ;;  %s44_s10 = scalar_lea.hbm %s128_s0, 256 }
   0x2   :  { %s14_s7 = sshll.u32 %s92_s6, 4  ;;  %p45_p0 = scmp.ne.s32.totalorder %s128_s0, %s44_s10  ;;  %s15_s7 = int_to_ptr.vmem [resolvable:$true] %s14_s7 }
   0x3   :  { %p48_p1 = scmp.lt.u32.totalorder %s44_s10, %s128_s0 }
   0x5   :  { %p50_p2 = pnand %p48_p1, %p45_p0 }
   0x7   :  { %53 = shalt.err (!%p50_p2)
}
   0x8   :  { %s54_s15 = scalar_lea.vmem %s15_s7, 256  ;;  %p59_p4 = scmp.lt.s32.totalorder %s15_s7, %s15_s7 }
   0x9   :  { %p55_p3 = scmp.ne.s32.totalorder %s15_s7, %s54_s15  ;;  %p60_p5 = scmp.lt.s32.totalorder %s54_s15, %s54_s15 }
   0xb   :  { %p61_p6 = por %p60_p5, %p59_p4 }
   0xd   :  { %p62_p7 = pnand %p61_p6, %p55_p3 }
   0xf   :  { %65 = shalt.err (!%p62_p7)
}
  0x10   :  { %17 = dma.hbm_to_vmem [thread:$0]  %s128_s0, 256, %s15_s7, [#allocation3]  }
  0x11   :  { %88 = dma.done.wait [#allocation3], 256  }
  0x12   :  { %89 = vsyncadd [#allocation3], 4294967040  ;;  %s93_s18 = smov [#allocation5]   ;;  %v21_v0 = vld [vmem:[#allocation2] sm:$0xff]  ;;  %v22_v1 = vld [vmem:[#allocation2 + $0x8] sm:$0xff] }
  0x13   :  { %s33_s19 = sshll.u32 %s93_s18, 4  ;;  %v23_v2 = vadd.f32 0.6, %v21_v0  ;;  %v24_v3 = vadd.f32 0.6, %v22_v1  ;;  %s34_s19 = int_to_ptr.vmem [resolvable:$true] %s33_s19 }
  0x14   :  { %s66_s20 = scalar_lea.vmem %s34_s19, 256  ;;  %p71_p9 = scmp.lt.s32.totalorder %s34_s19, %s34_s19 }
  0x15   :  { %25 = vst [vmem:[#allocation5] sm:$0xff] %v23_v2  ;;  %26 = vst [vmem:[#allocation5 + $0x8] sm:$0xff] %v24_v3  ;;  %p67_p8 = scmp.ne.s32.totalorder %s34_s19, %s66_s20  ;;  %p72_p10 = scmp.lt.s32.totalorder %s66_s20, %s66_s20 }
  0x17   :  { %p73_p11 = por %p72_p10, %p71_p9 }
  0x19   :  { %p74_p12 = pnand %p73_p11, %p67_p8 }
  0x1b   :  { %77 = shalt.err (!%p74_p12)
}
  0x1c   :  { %s78_s22 = scalar_lea.hbm %s129_s1, 256 }
  0x1d   :  { %p79_p13 = scmp.ne.s32.totalorder %s129_s1, %s78_s22  ;;  %p82_p0 = scmp.lt.u32.totalorder %s78_s22, %s129_s1 }
  0x1f   :  { %p84_p1 = pnand %p82_p0, %p79_p13 }
  0x21   :  { %87 = shalt.err (!%p84_p1)
}
  0x22   :  { %36 = dma.vmem_to_hbm [thread:$0]  %s34_s19, 256, %s129_s1, [#allocation4]  }
  0x23   :  { %90 = dma.done.wait [#allocation4], 256  }
  0x24   :  { %91 = vsyncadd [#allocation4], 4294967040 }
  0x25   :  { %40 = vsyncpa [#allocation3], 1 }
  0x26   :  { %41 = vsyncpa [#allocation4], 1 }

</bundles_post_ra>
